<compile_context>
chip_gen: v7x
topology: tpu7x:2x2x1
jax: 0.10.0
libtpu: 0.0.40
codegen_flags: <defaults>
</compile_context>

<pallas_src>
import math
import functools

import jax
import jax.numpy as jnp
from jax.experimental import pallas as pl
from jax.experimental.pallas import tpu as pltpu


def _sinusoidal_kernel(x_ref, freqs_ref, out_ref, *, tb):
    # x_ref:     (B_pad, 1)   f32 timesteps, fully VMEM-resident (fetched once)
    # freqs_ref: (1, half)    f32 static frequency table, VMEM-resident
    # out_ref:   (tb, 2*half) output row tile, [sin | cos] along the lane axis
    half = freqs_ref.shape[1]
    row0 = pl.program_id(0) * tb
    if tb % 8 == 0:
        row0 = pl.multiple_of(row0, 8)          # aligned sublane slice
    x = x_ref[pl.ds(row0, tb), :]               # (tb, 1)
    arg = x * freqs_ref[...]                    # (tb, half), f32 math (v5e-safe)
    s = jnp.sin(arg)
    c = jnp.cos(arg)
    if half % 128 == 0:
        # Both slabs are 128-lane aligned: two full (unmasked) stores.
        out_ref[:, :half] = s.astype(out_ref.dtype)
        out_ref[:, half:] = c.astype(out_ref.dtype)
    else:
        # Narrow / unaligned half: build the tile in registers and issue a single
        # store per vreg row instead of two masked sub-range stores.
        out_ref[...] = jnp.concatenate([s, c], axis=-1).astype(out_ref.dtype)


def _round_up(n, m):
    return ((n + m - 1) // m) * m


_TARGET_TILE_BYTES = 2 * 1024 * 1024  # ~2 MiB output tile -> ~4 MiB double-buffered


@functools.partial(jax.jit, static_argnames=("dim", "out_dtype"))
def _sinusoidal_pos_emb_impl(x2d, dim, out_dtype):
    B = x2d.shape[0]
    half = dim // 2
    width = 2 * half                       # PyTorch ref emits 2*(dim//2) columns
    out_bytes = jnp.dtype(out_dtype).itemsize

    # Static frequency table, computed once in the wrapper (no per-tile iota/exp).
    scale = math.log(10000.0) / (half - 1)
    freqs = jnp.exp(jnp.arange(half, dtype=jnp.float32) * (-scale)).reshape(1, half)

    # dim-aware row tile: ~2 MiB of output per tile, multiple of 8 sublanes,
    # capped at ceil(B/2) (rounded to 8) so v7x megacore gets >= 2 grid steps.
    rows_target = max(8, (_TARGET_TILE_BYTES // max(1, width * out_bytes)) // 8 * 8)
    rows_cap = _round_up((B + 1) // 2, 8)
    tb = max(8, min(rows_target, rows_cap))
    if tb >= B:
        tb = B                              # single full block (always legal)
    n_blocks = pl.cdiv(B, tb)

    # Pad ONLY the tiny timestep vector so the resident-x dynamic slice of the
    # ragged last block stays in bounds; the output keeps its exact (B, width)
    # shape -> no wasted compute/writeback and no trailing HBM->HBM slice copy.
    b_pad = n_blocks * tb
    if b_pad != B:
        x2d = jnp.pad(x2d, ((0, b_pad - B), (0, 0)))

    cost = pl.CostEstimate(
        flops=B * half,                     # the x * freq multiply
        transcendentals=2 * B * half,       # sin + cos
        bytes_accessed=b_pad * 4 + half * 4 + B * width * out_bytes,
    )

    return pl.pallas_call(
        functools.partial(_sinusoidal_kernel, tb=tb),
        out_shape=jax.ShapeDtypeStruct((B, width), out_dtype),
        grid=(n_blocks,),
        in_specs=[
            pl.BlockSpec((b_pad, 1), lambda i: (0, 0)),   # resident timesteps
            pl.BlockSpec((1, half), lambda i: (0, 0)),    # resident freq table
        ],
        out_specs=pl.BlockSpec((tb, width), lambda i: (i, 0)),
        compiler_params=pltpu.CompilerParams(
            dimension_semantics=("parallel",),  # shard batch axis on v7x megacore
            # footprint is bounded to a few MiB by construction, so the default
            # scoped-VMEM limit is sufficient on v5e/v6e/v7x -> no override needed.
        ),
        cost_estimate=cost,
    )(x2d, freqs)


def sinusoidal_pos_emb(x, dim: int, *, out_dtype=jnp.float32):
    """Pallas equivalent of SinusoidalPosEmb(dim)(x).

    Accepts a python int, a 0-d array, or a 1-D array of timesteps.  Mirrors the
    PyTorch module: the output has 2*(dim//2) columns (== dim for even dim).
    Default out_dtype float32 matches the reference; pass jnp.bfloat16 to halve
    HBM writeback for bf16 consumers (math stays f32, cast only at the store).
    """
    half = dim // 2
    if half < 2:
        raise ValueError("dim must be >= 4 so that half_dim - 1 > 0")
    if isinstance(x, int):
        x = jnp.array([float(x)], dtype=jnp.float32)
    else:
        x = jnp.asarray(x, dtype=jnp.float32)
        if x.ndim == 0:
            x = x[None]
    B = x.shape[0]
    return _sinusoidal_pos_emb_impl(x.reshape(B, 1), dim=dim, out_dtype=out_dtype)


def _reference(x, dim):
    # pure-JAX reference mirroring the PyTorch forward
    x = jnp.asarray(x, dtype=jnp.float32)
    half_dim = dim // 2
    emb = math.log(10000.0) / (half_dim - 1)
    emb = jnp.exp(jnp.arange(half_dim, dtype=jnp.float32) * -emb)
    emb = x[:, None] * emb[None, :]
    return jnp.concatenate([jnp.sin(emb), jnp.cos(emb)], axis=-1)


if __name__ == "__main__":
    dim = 32          # embedding dimension (module arg)
    batch = 8         # number of timesteps

    key = jax.random.PRNGKey(0)
    # Diffusion-style integer timesteps; kept modest (< 100) so the comparison
    # against the XLA reference is not dominated by sin/cos range-reduction
    # differences at large arguments.
    t = jax.random.randint(key, (batch,), 0, 100).astype(jnp.float32)

    out = jax.block_until_ready(sinusoidal_pos_emb(t, dim))
    ref = _reference(t, dim)
    assert out.shape == (batch, dim), out.shape
    assert out.dtype == jnp.float32, out.dtype
    assert jnp.allclose(out, ref, atol=1e-3, rtol=1e-3), \
        float(jnp.max(jnp.abs(out - ref)))

    # Ragged batch (not a multiple of the row tile) exercises the cdiv grid path.
    t2 = jax.random.randint(jax.random.PRNGKey(1), (13,), 0, 100).astype(jnp.float32)
    out2 = jax.block_until_ready(sinusoidal_pos_emb(t2, dim))
    assert out2.shape == (13, dim)
    assert jnp.allclose(out2, _reference(t2, dim), atol=1e-3, rtol=1e-3)

    # Plain-int input path.
    out3 = jax.block_until_ready(sinusoidal_pos_emb(7, dim))
    assert jnp.allclose(out3, _reference(jnp.array([7.0]), dim),
                        atol=1e-3, rtol=1e-3)

    print("KERNEL_OK")
</pallas_src>

<mosaic_0001>
module attributes {stable_mosaic.version = 11 : i64} {
  func.func @_sinusoidal_kernel(%arg0: i32, %arg1: memref<8x1xf32, #tpu.memory_space<vmem>>, %arg2: memref<1x16xf32, #tpu.memory_space<vmem>>, %arg3: memref<8x32xf32, #tpu.memory_space<vmem>>) attributes {dimension_semantics = [#tpu.dimension_semantics<parallel>], iteration_bounds = array<i64: 1>, scalar_prefetch = 0 : i64, scratch_operands = 0 : i64, tpu.core_type = #tpu.core_type<tc>, window_params = [{pipeline_mode = #tpu.pipeline_mode<synchronous>, transform_indices = @transform_0, window_bounds = array<i64: 8, 1>}, {pipeline_mode = #tpu.pipeline_mode<synchronous>, transform_indices = @transform_1, window_bounds = array<i64: 1, 16>}, {transform_indices = @transform_2, window_bounds = array<i64: 8, 32>}]} {
    %c8_i32 = arith.constant 8 : i32
    %0 = arith.muli %arg0, %c8_i32 : i32
    %1 = tpu.assume_multiple %0, 8 : i32
    %2 = arith.index_cast %1 : i32 to index
    %c0 = arith.constant 0 : index
    %3 = vector.load %arg1[%2, %c0] : memref<8x1xf32, #tpu.memory_space<vmem>>, vector<8x1xf32>
    %c0_0 = arith.constant 0 : index
    %c0_1 = arith.constant 0 : index
    %4 = vector.load %arg2[%c0_0, %c0_1] : memref<1x16xf32, #tpu.memory_space<vmem>>, vector<1x16xf32>
    %5 = vector.broadcast %3 : vector<8x1xf32> to vector<8x16xf32>
    %6 = vector.broadcast %4 : vector<1x16xf32> to vector<8x16xf32>
    %7 = arith.mulf %5, %6 : vector<8x16xf32>
    %8 = math.sin %7 : vector<8x16xf32>
    %9 = math.cos %7 : vector<8x16xf32>
    %10 = tpu.concatenate %8, %9 in 1 : vector<8x16xf32>, vector<8x16xf32> -> vector<8x32xf32>
    %c0_2 = arith.constant 0 : index
    %c0_3 = arith.constant 0 : index
    %11 = vector.load %arg3[%c0_2, %c0_3] : memref<8x32xf32, #tpu.memory_space<vmem>>, vector<8x32xf32>
    tpu.vector_store %arg3[%c0_2, %c0_3], %10 {strides = array<i32>} : memref<8x32xf32, #tpu.memory_space<vmem>>, vector<8x32xf32>,
    return
  }
  func.func @transform_0(%arg0: i32) -> (i32, i32) {
    %c0_i32 = arith.constant 0 : i32
    %c0_i32_0 = arith.constant 0 : i32
    %c0_i32_1 = arith.constant 0 : i32
    return %c0_i32, %c0_i32_0 : i32, i32
  }
  func.func @transform_1(%arg0: i32) -> (i32, i32) {
    %c0_i32 = arith.constant 0 : i32
    %c0_i32_0 = arith.constant 0 : i32
    %c0_i32_1 = arith.constant 0 : i32
    return %c0_i32, %c0_i32_0 : i32, i32
  }
  func.func @transform_2(%arg0: i32) -> (i32, i32) {
    %c0_i32 = arith.constant 0 : i32
    %c0_i32_0 = arith.constant 0 : i32
    return %arg0, %c0_i32 : i32, i32
  }
}

</mosaic_0001>

<bundles_post_ra>
// kernel: _sinusoidal_pos_emb_impl.1
= control target key start
LH: loop header
LB: loop body
LE: loop exit
PB: predicated region body
PF: predicated region fallthrough
CT: control target
= control target key end

     0   :  { %v308_v1 = vmov 0   ;;  %s371_s0 = inlined_call_operand.vmem [shape: f32[8,1], index: 0, kind: input, shape index: {}]   ;;  %s372_s1 = inlined_call_operand.vmem [shape: f32[1,16], index: 1, kind: input, shape index: {}]   ;;  %s373_s2 = inlined_call_operand.hbm [shape: f32[8,32], index: 2, kind: output, shape index: {}]  }
   0x1   :  { %v14_v0 = vld [vmem:[%s371_s0] sm:$0xff]  ;;  %279 = vset.pattern.permute.xlu0 %v308_v1 }
   0x2   :  { %18 = vperm.xlu0 %279, %v14_v0  }
   0x3   :  { %7 = vsyncpa [#allocation3], 0  ;;  %v257_v2 = vld [vmem:[%s372_s1] ss:$0 sm:$0xff]  ;;  %v309_v15 = vmov 683565275  }
   0x4   :  { %v310_v17 = vmov 2475754826   ;;  %v311_v20 = vmov 2131351028   ;;  %v312_v23 = vmov 2102212464  }
   0x5   :  { %v313_v26 = vmov 920167782   ;;  %v314_v29 = vmov 1326507024   ;;  %s315_s0 = smov 16   ;;  %s316_s1 = smov [#allocation2]  }
   0x6   :  { %s249_s13 = sshll.u32 %s316_s1, 4  ;;  %s250_s13 = int_to_ptr.vmem [resolvable:$true] %s249_s13 }
   0x7   :  { %s284_s14 = scalar_lea.vmem %s250_s13, 128  ;;  %p289_p1 = scmp.lt.s32.totalorder %s250_s13, %s250_s13 }
   0x8   :  { %p285_p0 = scmp.ne.s32.totalorder %s250_s13, %s284_s14  ;;  %p290_p2 = scmp.lt.s32.totalorder %s284_s14, %s284_s14 }
   0xa   :  { %p291_p3 = por %p290_p2, %p289_p1 }
   0xc   :  { %p292_p4 = pnand %p291_p3, %p285_p0 }
  0x81   :  { %v19_v3 = vpop.permute.xlu0 %18 }
  0x82   :  { %v338_v4 = vmul.f32 %v257_v2, %v19_v3 }
  0x84   :  { %v31_v5 = vand.u32 2139095040, %v338_v4  ;;  %v28_v9 = vand.u32 2147483647, %v338_v4  ;;  %vm30_vm7 = vcmp.lt.s32.totalorder %v338_v4, 0  ;;  %vm120_vm15 = vweird.f32 %v338_v4 }
  0x86   :  { %v32_v6 = vshrl.u32 %v31_v5, 23  ;;  %v35_v12 = vand.u32 8388607, %v28_v9  ;;  %vm29_vm8 = vcmp.le.f32.partialorder %v28_v9, 0.7853982 }
  0x88   :  { %v258_v7 = vadd.s32 4294967169, %v32_v6  ;;  %v36_v31 = vor.u32 8388608, %v35_v12 }
  0x8a   :  { %v38_v8 = vadd.s32 1, %v258_v7  ;;  %v76_v45 = vshll.u32 %v36_v31, 8 }
  0x8c   :  { %vm39_vm0 = vcmp.gt.s32.totalorder %v38_v8, 0 }
  0x8d   :  { %v40_v10 = vsel %vm39_vm0, %v38_v8, 0  ;;  %vm239_vm0 = vcmask 130048  }
  0x8e   :  { %v42_v11 = vand.u32 31, %v40_v10  ;;  %v41_v14 = vshrl.u32 %v40_v10, 5 }
  0x90   :  { %v43_v13 = vsub.s32 32, %v42_v11  ;;  %v45_v16 = vshll.u32 %v309_v15, %v42_v11  ;;  %v48_v18 = vshll.u32 %v310_v17, %v42_v11  ;;  %v51_v22 = vshll.u32 %v311_v20, %v42_v11 }
  0x91   :  { %v54_v25 = vshll.u32 %v312_v23, %v42_v11  ;;  %v57_v28 = vshll.u32 %v313_v26, %v42_v11  ;;  %vm60_vm1 = vcmp.lt.s32.totalorder %v41_v14, 1  ;;  %vm63_vm2 = vcmp.lt.s32.totalorder %v41_v14, 4 }
  0x92   :  { %v46_v19 = vshrl.u32 %v310_v17, %v43_v13  ;;  %v49_v21 = vshrl.u32 %v311_v20, %v43_v13  ;;  %v52_v24 = vshrl.u32 %v312_v23, %v43_v13  ;;  %v55_v27 = vshrl.u32 %v313_v26, %v43_v13 }
  0x93   :  { %v58_v30 = vshrl.u32 %v314_v29, %v43_v13  ;;  %v44_v40 = vshrl.u32 %v309_v15, %v43_v13  ;;  %vm62_vm3 = vcmp.lt.s32.totalorder %v41_v14, 3  ;;  %vm61_vm4 = vcmp.lt.s32.totalorder %v41_v14, 2 }
  0x94   :  { %v47_v32 = vor.u32 %v46_v19, %v45_v16  ;;  %v50_v33 = vor.u32 %v49_v21, %v48_v18  ;;  %v53_v34 = vor.u32 %v52_v24, %v51_v22  ;;  %v56_v35 = vor.u32 %v55_v27, %v54_v25 }
  0x95   :  { %v59_v36 = vor.u32 %v58_v30, %v57_v28 }
  0x96   :  { %v65_v37 = vsel %vm63_vm2, %v53_v34, 2102212464  ;;  %v68_v38 = vsel %vm60_vm1, %v47_v32, %v50_v33  ;;  %v72_v39 = vsel %vm60_vm1, %v50_v33, %v53_v34  ;;  %v69_v41 = vsel %vm63_vm2, %v56_v35, 920167782 }
  0x97   :  { %v73_v42 = vsel %vm63_vm2, %v59_v36, 1326507024  ;;  %v70_v43 = vsel %vm62_vm3, %v53_v34, %v69_v41  ;;  %v64_v46 = vsel %vm60_vm1, %v44_v40, %v47_v32  ;;  %v66_v47 = vsel %vm62_vm3, %v50_v33, %v65_v37 }
  0x98   :  { %v74_v44 = vsel %vm62_vm3, %v56_v35, %v73_v42  ;;  %v71_v48 = vsel %vm61_vm4, %v68_v38, %v70_v43  ;;  %v67_v54 = vsel %vm61_vm4, %v64_v46, %v66_v47  ;;  %vm241_vm1 = vcmask 261120  }
  0x99   :  { %v75_v49 = vsel %vm61_vm4, %v72_v39, %v74_v44  ;;  %v347_v52 = vmul.u32.u64.low %v76_v45, %v71_v48  ;;  %v348_v53 = vmul.u32.u64.high %v76_v45, %v71_v48, %v347_v52  ;;  %v83_v56 = vmul.u32 %v76_v45, %v67_v54 }
  0x9a   :  { %v344_v50 = vmul.u32.u64.low %v76_v45, %v75_v49  ;;  %v345_v51 = vmul.u32.u64.high %v76_v45, %v75_v49, %v344_v50 }
  0x9b   :  { %v86_v55 = vadd.s32 1, %v348_v53 }
  0x9c   :  { %vm85_vm5 = vc.u32 %v345_v51, %v347_v52  ;;  %v84_v5 = vadd.s32 %v347_v52, %v345_v51 }
  0x9d   :  { %v87_v57 = vsel %vm85_vm5, %v86_v55, %v348_v53 }
  0x9e   :  { %v88_v58 = vadd.s32 %v87_v57, %v83_v56 }
  0xa0   :  { %v89_v59 = vadd.s32 536870912, %v88_v58 }
  0xa2   :  { %v90_v60 = vshrl.u32 %v89_v59, 30 }
  0xa4   :  { %v91_v61 = vshll.u32 %v90_v60, 30  ;;  %v114_v18 = vsub.s32 4, %v90_v60 }
  0xa6   :  { %v92_v62 = vsub.s32 %v88_v58, %v91_v61  ;;  %v115_v21 = vsel %vm30_vm7, %v114_v18, %v90_v60 }
  0xa7   :  { %v117_v23 = vsel %vm29_vm8, 0, %v115_v21 }
  0xa8   :  { %v94_v63 = vsub.s32 0, %v92_v62  ;;  %v121_v24 = vadd.s32 3, %v117_v23  ;;  %v225_v26 = vand.u32 3, %v117_v23 }
  0xaa   :  { %v259_v0 = vmin.u32 %v94_v63, %v92_v62  ;;  %v122_v25 = vand.u32 3, %v121_v24  ;;  %vm230_vm10 = vcmp.eq.s32.totalorder %v225_v26, 2  ;;  %vm227_vm12 = vcmp.eq.s32.totalorder %v225_v26, 0 }
  0xab   :  { %vm226_vm14 = vcmp.lt.s32.totalorder %v225_v26, 2 }
  0xac   :  { %v96_v1 = vclz %v259_v0  ;;  %vm127_vm9 = vcmp.eq.s32.totalorder %v122_v25, 2  ;;  %vm124_vm11 = vcmp.eq.s32.totalorder %v122_v25, 0  ;;  %vm123_vm13 = vcmp.lt.s32.totalorder %v122_v25, 2 }
  0xae   :  { %v260_v2 = vadd.s32 4294967294, %v96_v1 }
  0xb0   :  { %vm261_vm6 = vcmp.lt.s32.totalorder %v260_v2, 0 }
  0xb1   :  { %v99_v3 = vsel %vm261_vm6, 0, %v260_v2 }
  0xb2   :  { %v100_v6 = vsub.s32 32, %v99_v3  ;;  %v104_v7 = vsub.s32 4294967266, %v99_v3  ;;  %v101_v8 = vshll.u32 %v92_v62, %v99_v3 }
  0xb4   :  { %v102_v10 = vshrl.u32 %v84_v5, %v100_v6  ;;  %v105_v11 = vadd.s32 127, %v104_v7 }
  0xb6   :  { %v103_v12 = vor.u32 %v102_v10, %v101_v8  ;;  %v106_v13 = vshll.u32 %v105_v11, 23 }
  0xb8   :  { %v107_v14 = vor.u32 4788187, %v106_v13  ;;  %v110_v16 = vcvt.s32.f32 %v103_v12 }
  0xba   :  { %v108_v15 = vand.u32 2147483647, %v107_v14 }
  0xbc   :  { %v111_v17 = vmul.f32 %v110_v16, %v108_v15 }
  0xbe   :  { %v112_v19 = vxor.u32 2147483648, %v111_v17 }
  0xc0   :  { %v113_v20 = vsel %vm30_vm7, %v112_v19, %v111_v17 }
  0xc1   :  { %v116_v22 = vsel %vm29_vm8, %v338_v4, %v113_v20 }
  0xc2   :  { %280 = vcosq.f32 %v116_v22 }
  0xc3   :  { %282 = vsinq.f32 %v116_v22 }
  0xcc   :  { %v281_v27 = vpop.eup %280 }
  0xcd   :  { %v283_v28 = vpop.eup %282  ;;  %v128_v29 = vxor.u32 2147483648, %v281_v27 }
  0xce   :  { %v125_v30 = vxor.u32 2147483648, %v283_v28 }
  0xcf   :  { %v232_v31 = vsel %vm230_vm10, %v128_v29, %v283_v28  ;;  %v129_v32 = vsel %vm127_vm9, %v128_v29, %v283_v28 }
  0xd0   :  { %v229_v9 = vsel %vm227_vm12, %v281_v27, %v125_v30  ;;  %v126_v33 = vsel %vm124_vm11, %v281_v27, %v125_v30 }
  0xd1   :  { %v233_v34 = vsel %vm226_vm14, %v229_v9, %v232_v31  ;;  %v130_v35 = vsel %vm123_vm13, %v126_v33, %v129_v32 }
  0xd2   :  { %v234_v36 = vsel %vm120_vm15, nan, %v233_v34  ;;  %v131_v37 = vsel %vm120_vm15, nan, %v130_v35 }
  0xd3   :  { %236 = vrot.lane.b32.xlu0 %v234_v36, %s315_s0 }
 0x145   :  { %v237_v38 = vpop.permute.xlu0 %236 }
 0x146   :  { %v240_v39 = vsel %vm239_vm0, %v131_v37, %v237_v38 }
 0x147   :  { %242 = vst.msk [vmem:[#allocation2] sm:$0xff] %vm241_vm1, %v240_v39 }
 0x148   :  { %295 = shalt.err (!%p292_p4)
}
 0x149   :  { %s296_s17 = scalar_lea.hbm %s373_s2, 128 }
 0x14a   :  { %p297_p5 = scmp.ne.s32.totalorder %s373_s2, %s296_s17  ;;  %p300_p6 = scmp.lt.u32.totalorder %s296_s17, %s373_s2 }
 0x14c   :  { %p302_p7 = pnand %p300_p6, %p297_p5 }
 0x14e   :  { %305 = shalt.err (!%p302_p7)
}
 0x14f   :  { %252 = dma.vmem_to_hbm [thread:$0]  %s250_s13, 128, %s373_s2, [#allocation3]  }
 0x150   :  { %306 = dma.done.wait [#allocation3], 128  }
 0x151   :  { %307 = vsyncadd [#allocation3], 4294967168 }
 0x152   :  { %256 = vsyncpa [#allocation3], 1 }

</bundles_post_ra>
